<compile_context>
chip_gen: v6e
topology: v6e:2x2x1
jax: 0.10.0
libtpu: 0.0.40
codegen_flags: <defaults>
</compile_context>

<pallas_src>
import math

import jax
import jax.numpy as jnp
import numpy as np
from jax.experimental import pallas as pl
from jax.experimental.pallas import tpu as pltpu  # noqa: F401

# ---------------------------------------------------------------------------
# Small synthetic shapes consistent with the forward pass.
# ---------------------------------------------------------------------------
B = 2        # batch
S = 8        # sequence length
H = 32       # hidden_size   (DeBERTa-large would be 1024)
F = 64       # FFN intermediate size
L = 4        # num_labels_B  (task-B sexism categories)

VEC_W = 4 * H            # 128: lane width of the packed parameter slabs
assert 3 * H <= VEC_W and F <= VEC_W and H <= VEC_W

# Rows of the packed (8, 128) bias / layernorm-parameter slab.
ROW_BQKV, ROW_BO, ROW_LN1G, ROW_LN1B, ROW_B1, ROW_B2, ROW_LN2G, ROW_LN2B = range(8)


def _gelu_tanh(x):
    # tanh-approx GELU (lowered on the EUP transcendental path)
    c = math.sqrt(2.0 / math.pi)
    return 0.5 * x * (1.0 + jnp.tanh(c * (x + 0.044715 * x * x * x)))


def _layernorm(x, gamma, beta, eps=1e-5):
    mu = jnp.mean(x, axis=-1, keepdims=True)
    var = jnp.mean((x - mu) * (x - mu), axis=-1, keepdims=True)
    return (x - mu) * jax.lax.rsqrt(var + eps) * gamma + beta


def _fused_encoder_kernel(x_ref, wqkvo_ref, w1_ref, w2_ref, vec_ref, hidden_ref):
    """Whole batch in one invocation: fused QKV, attention, FFN, 2x layernorm."""
    x2 = x_ref[...].reshape(B * S, H)                       # (B*S, H)
    vec = vec_ref[...]                                      # (8, 128) packed params

    # --- fused Q|K|V projection: one lane-dense (H, 4H) matmul ----------------
    # Columns 3H:4H (the wo block) of the product are unused junk; bias row 0 is
    # zero there, so they are simply never read.
    qkvo = jnp.dot(x2, wqkvo_ref[...], preferred_element_type=jnp.float32)
    qkvo = qkvo + vec[ROW_BQKV:ROW_BQKV + 1, :]
    q = qkvo[:, 0 * H:1 * H].reshape(B, S, H)
    k = qkvo[:, 1 * H:2 * H].reshape(B, S, H)
    v = qkvo[:, 2 * H:3 * H].reshape(B, S, H)

    # --- batched scaled-dot-product attention ---------------------------------
    # Contract the last dim of both q and k: no transposed copy of k.
    scores = jax.lax.dot_general(
        q, k, (((2,), (2,)), ((0,), (0,))),
        preferred_element_type=jnp.float32) * (1.0 / math.sqrt(H))   # (B, S, S)
    scores = scores - jnp.max(scores, axis=-1, keepdims=True)
    p = jnp.exp(scores)
    p = p * pl.reciprocal(jnp.sum(p, axis=-1, keepdims=True), approx=True)
    attn = jax.lax.dot_general(
        p, v, (((2,), (1,)), ((0,), (0,))),
        preferred_element_type=jnp.float32).reshape(B * S, H)        # (B*S, H)

    wo = wqkvo_ref[:, 3 * H:4 * H]                          # (H, H) slice of the slab
    attn = jnp.dot(attn, wo, preferred_element_type=jnp.float32) \
        + vec[ROW_BO:ROW_BO + 1, :H]

    h1 = _layernorm(x2 + attn,
                    vec[ROW_LN1G:ROW_LN1G + 1, :H],
                    vec[ROW_LN1B:ROW_LN1B + 1, :H])

    # --- feed-forward ----------------------------------------------------------
    ff = jnp.dot(h1, w1_ref[...], preferred_element_type=jnp.float32) \
        + vec[ROW_B1:ROW_B1 + 1, :F]
    ff = _gelu_tanh(ff)
    ff = jnp.dot(ff, w2_ref[...], preferred_element_type=jnp.float32) \
        + vec[ROW_B2:ROW_B2 + 1, :H]

    hidden = _layernorm(h1 + ff,
                        vec[ROW_LN2G:ROW_LN2G + 1, :H],
                        vec[ROW_LN2B:ROW_LN2B + 1, :H])
    hidden_ref[...] = hidden.reshape(B, S, H)


@jax.jit
def sexist_model_forward(x, params):
    """Pallas forward. x: (B, S, H) f32 'inputs_embeds'. Returns (logits, hidden)."""
    (wq, bq, wk, bk, wv, bv, wo, bo,
     ln1g, ln1b, w1, b1, w2, b2, ln2g, ln2b, wh, bh) = params

    # Pack once on the wrapper side: [wq|wk|wv|wo] -> (H, 4H) lane-dense slab,
    # all biases / LN params -> one (8, 128) slab (a single DMA instead of 12+).
    w_qkvo = jnp.concatenate([wq, wk, wv, wo], axis=1)                  # (H, 4H)
    vec = jnp.zeros((8, VEC_W), jnp.float32)
    vec = vec.at[ROW_BQKV, 0:3 * H].set(jnp.concatenate([bq, bk, bv], axis=1)[0])
    vec = vec.at[ROW_BO,   0:H].set(bo[0])
    vec = vec.at[ROW_LN1G, 0:H].set(ln1g[0])
    vec = vec.at[ROW_LN1B, 0:H].set(ln1b[0])
    vec = vec.at[ROW_B1,   0:F].set(b1[0])
    vec = vec.at[ROW_B2,   0:H].set(b2[0])
    vec = vec.at[ROW_LN2G, 0:H].set(ln2g[0])
    vec = vec.at[ROW_LN2B, 0:H].set(ln2b[0])

    hidden = pl.pallas_call(
        _fused_encoder_kernel,
        out_shape=jax.ShapeDtypeStruct((B, S, H), jnp.float32),
        in_specs=[
            pl.BlockSpec((B, S, H), lambda: (0, 0, 0)),   # x (whole batch, no grid)
            pl.BlockSpec((H, 4 * H), lambda: (0, 0)),     # packed [wq|wk|wv|wo]
            pl.BlockSpec((H, F), lambda: (0, 0)),         # w1
            pl.BlockSpec((F, H), lambda: (0, 0)),         # w2
            pl.BlockSpec((8, VEC_W), lambda: (0, 0)),     # packed biases / LN params
        ],
        out_specs=pl.BlockSpec((B, S, H), lambda: (0, 0, 0)),
    )(x, w_qkvo, w1, w2, vec)

    # Tiny CLS classification head (B x H @ H x L) stays a fused XLA op here:
    # keeps the kernel free of a 4-lane-wide masked-store output + 2 extra DMAs.
    cls = hidden[:, 0, :]
    logits = (jnp.dot(cls, wh) + bh).reshape(-1, L)
    return logits, hidden


# ---------------------------------------------------------------------------
# Pure-JAX reference (same math) for a correctness check.
# ---------------------------------------------------------------------------
def reference_forward(x, params):
    (wq, bq, wk, bk, wv, bv, wo, bo,
     ln1g, ln1b, w1, b1, w2, b2, ln2g, ln2b, wh, bh) = params
    q = x @ wq + bq
    k = x @ wk + bk
    v = x @ wv + bv
    scores = jnp.einsum("bsh,bth->bst", q, k) / math.sqrt(H)
    p = jax.nn.softmax(scores, axis=-1)
    attn = jnp.einsum("bst,bth->bsh", p, v) @ wo + bo
    h1 = _layernorm(x + attn, ln1g, ln1b)
    ff = _gelu_tanh(h1 @ w1 + b1) @ w2 + b2
    hidden = _layernorm(h1 + ff, ln2g, ln2b)
    logits = hidden[:, 0, :] @ wh + bh.reshape(-1)
    return logits.reshape(-1, L), hidden


def init_params(key):
    keys = jax.random.split(key, 12)
    n = lambda k, shp, scl: (jax.random.normal(k, shp, jnp.float32) * scl)
    wq = n(keys[0], (H, H), 0.05)
    wk = n(keys[1], (H, H), 0.05)
    wv = n(keys[2], (H, H), 0.05)
    wo = n(keys[3], (H, H), 0.05)
    w1 = n(keys[4], (H, F), 0.05)
    w2 = n(keys[5], (F, H), 0.05)
    wh = n(keys[6], (H, L), 0.05)
    bq = n(keys[7], (1, H), 0.01)
    bk = n(keys[8], (1, H), 0.01)
    bv = n(keys[9], (1, H), 0.01)
    bo = jnp.zeros((1, H), jnp.float32)
    b1 = n(keys[10], (1, F), 0.01)
    b2 = jnp.zeros((1, H), jnp.float32)
    bh = n(keys[11], (1, L), 0.01)
    ln1g = jnp.ones((1, H), jnp.float32)
    ln1b = jnp.zeros((1, H), jnp.float32)
    ln2g = jnp.ones((1, H), jnp.float32)
    ln2b = jnp.zeros((1, H), jnp.float32)
    return (wq, bq, wk, bk, wv, bv, wo, bo,
            ln1g, ln1b, w1, b1, w2, b2, ln2g, ln2b, wh, bh)


if __name__ == "__main__":
    key = jax.random.PRNGKey(0)
    kx, kp = jax.random.split(key)
    x = jax.random.normal(kx, (B, S, H), jnp.float32)  # synthetic inputs_embeds
    params = init_params(kp)

    # TODO(synk): pretrained DeBERTa-v3-large weights / 24-layer disentangled
    # attention and the unused `integrate` span-pooling helper are not reproduced.

    logits, hidden = sexist_model_forward(x, params)
    jax.block_until_ready((logits, hidden))

    ref_logits, ref_hidden = reference_forward(x, params)
    assert logits.shape == (B, L) and hidden.shape == (B, S, H)
    # Tolerance loosened from 1e-4 -> 1e-3: pl.reciprocal(approx=True) in the
    # softmax denominator has ~2^-12 relative error (EUP vrcp).
    np.testing.assert_allclose(np.asarray(logits), np.asarray(ref_logits),
                               rtol=1e-3, atol=1e-3)
    np.testing.assert_allclose(np.asarray(hidden), np.asarray(ref_hidden),
                               rtol=1e-3, atol=1e-3)
    print("KERNEL_OK")
</pallas_src>

<mosaic_0001>
module attributes {stable_mosaic.version = 11 : i64} {
  func.func @_fused_encoder_kernel(%arg0: memref<2x8x32xf32, #tpu.memory_space<vmem>>, %arg1: memref<32x128xf32, #tpu.memory_space<vmem>>, %arg2: memref<32x64xf32, #tpu.memory_space<vmem>>, %arg3: memref<64x32xf32, #tpu.memory_space<vmem>>, %arg4: memref<8x128xf32, #tpu.memory_space<vmem>>, %arg5: memref<2x8x32xf32, #tpu.memory_space<vmem>>) attributes {dimension_semantics = [], scalar_prefetch = 0 : i64, scratch_operands = 0 : i64, tpu.core_type = #tpu.core_type<tc>} {
    %c0 = arith.constant 0 : index
    %c0_0 = arith.constant 0 : index
    %c0_1 = arith.constant 0 : index
    %0 = vector.load %arg0[%c0, %c0_0, %c0_1] : memref<2x8x32xf32, #tpu.memory_space<vmem>>, vector<2x8x32xf32>
    %1 = vector.shape_cast %0 : vector<2x8x32xf32> to vector<16x32xf32>
    %c0_2 = arith.constant 0 : index
    %c0_3 = arith.constant 0 : index
    %2 = vector.load %arg4[%c0_2, %c0_3] : memref<8x128xf32, #tpu.memory_space<vmem>>, vector<8x128xf32>
    %c0_4 = arith.constant 0 : index
    %c0_5 = arith.constant 0 : index
    %3 = vector.load %arg1[%c0_4, %c0_5] : memref<32x128xf32, #tpu.memory_space<vmem>>, vector<32x128xf32>
    %cst = arith.constant dense<0.000000e+00> : vector<16x128xf32>
    %4 = tpu.matmul %1, %3, %cst {dimension_numbers = #tpu.dot_dimension_numbers<[1], [0], [0], [1], [0, 0, 1, 1], [], []>} : vector<16x32xf32>, vector<32x128xf32>, vector<16x128xf32> -> vector<16x128xf32>
    %5 = vector.extract_strided_slice %2 {offsets = [0, 0], sizes = [1, 128], strides = [1, 1]} : vector<8x128xf32> to vector<1x128xf32>
    %6 = vector.broadcast %5 : vector<1x128xf32> to vector<16x128xf32>
    %7 = arith.addf %4, %6 : vector<16x128xf32>
    %8 = vector.extract_strided_slice %7 {offsets = [0, 0], sizes = [16, 32], strides = [1, 1]} : vector<16x128xf32> to vector<16x32xf32>
    %9 = vector.shape_cast %8 : vector<16x32xf32> to vector<2x8x32xf32>
    %10 = vector.extract_strided_slice %7 {offsets = [0, 32], sizes = [16, 32], strides = [1, 1]} : vector<16x128xf32> to vector<16x32xf32>
    %11 = vector.shape_cast %10 : vector<16x32xf32> to vector<2x8x32xf32>
    %12 = vector.extract_strided_slice %7 {offsets = [0, 64], sizes = [16, 32], strides = [1, 1]} : vector<16x128xf32> to vector<16x32xf32>
    %13 = vector.shape_cast %12 : vector<16x32xf32> to vector<2x8x32xf32>
    %cst_6 = arith.constant dense<0.000000e+00> : vector<2x8x8xf32>
    %14 = tpu.matmul %9, %11, %cst_6 {dimension_numbers = #tpu.dot_dimension_numbers<[2], [2], [1], [1], [0, 0, 0, 1, 1, 1], [0], [0]>} : vector<2x8x32xf32>, vector<2x8x32xf32>, vector<2x8x8xf32> -> vector<2x8x8xf32>
    %cst_7 = arith.constant 0.176776692 : f32
    %15 = vector.broadcast %cst_7 : f32 to vector<2x8x8xf32>
    %16 = arith.mulf %14, %15 : vector<2x8x8xf32>
    %cst_8 = arith.constant dense<0xFF800000> : vector<2x8xf32>
    %17 = vector.multi_reduction <maximumf>, %16, %cst_8 [2] : vector<2x8x8xf32> to vector<2x8xf32>
    %18 = vector.shape_cast %17 : vector<2x8xf32> to vector<2x8x1xf32>
    %19 = vector.broadcast %18 : vector<2x8x1xf32> to vector<2x8x8xf32>
    %20 = arith.subf %16, %19 : vector<2x8x8xf32>
    %21 = math.exp %20 : vector<2x8x8xf32>
    %cst_9 = arith.constant dense<0.000000e+00> : vector<2x8xf32>
    %22 = vector.multi_reduction <add>, %21, %cst_9 [2] : vector<2x8x8xf32> to vector<2x8xf32>
    %23 = vector.shape_cast %22 : vector<2x8xf32> to vector<2x8x1xf32>
    %24 = tpu.reciprocal %23 {approx = true} : vector<2x8x1xf32> -> vector<2x8x1xf32>
    %25 = vector.broadcast %24 : vector<2x8x1xf32> to vector<2x8x8xf32>
    %26 = arith.mulf %21, %25 : vector<2x8x8xf32>
    %cst_10 = arith.constant dense<0.000000e+00> : vector<2x8x32xf32>
    %27 = tpu.matmul %26, %13, %cst_10 {dimension_numbers = #tpu.dot_dimension_numbers<[2], [1], [1], [2], [0, 0, 0, 1, 1, 2], [0], [0]>} : vector<2x8x8xf32>, vector<2x8x32xf32>, vector<2x8x32xf32> -> vector<2x8x32xf32>
    %28 = vector.shape_cast %27 : vector<2x8x32xf32> to vector<16x32xf32>
    %c0_11 = arith.constant 0 : index
    %c96 = arith.constant 96 : index
    %29 = vector.load %arg1[%c0_11, %c96] : memref<32x128xf32, #tpu.memory_space<vmem>>, vector<32x32xf32>
    %cst_12 = arith.constant dense<0.000000e+00> : vector<16x32xf32>
    %30 = tpu.matmul %28, %29, %cst_12 {dimension_numbers = #tpu.dot_dimension_numbers<[1], [0], [0], [1], [0, 0, 1, 1], [], []>} : vector<16x32xf32>, vector<32x32xf32>, vector<16x32xf32> -> vector<16x32xf32>
    %31 = vector.extract_strided_slice %2 {offsets = [1, 0], sizes = [1, 32], strides = [1, 1]} : vector<8x128xf32> to vector<1x32xf32>
    %32 = vector.broadcast %31 : vector<1x32xf32> to vector<16x32xf32>
    %33 = arith.addf %30, %32 : vector<16x32xf32>
    %34 = arith.addf %1, %33 : vector<16x32xf32>
    %35 = vector.extract_strided_slice %2 {offsets = [2, 0], sizes = [1, 32], strides = [1, 1]} : vector<8x128xf32> to vector<1x32xf32>
    %36 = vector.extract_strided_slice %2 {offsets = [3, 0], sizes = [1, 32], strides = [1, 1]} : vector<8x128xf32> to vector<1x32xf32>
    %cst_13 = arith.constant dense<0.000000e+00> : vector<16xf32>
    %37 = vector.multi_reduction <add>, %34, %cst_13 [1] : vector<16x32xf32> to vector<16xf32>
    %38 = vector.shape_cast %37 : vector<16xf32> to vector<16x1xf32>
    %cst_14 = arith.constant 3.200000e+01 : f32
    %39 = vector.broadcast %cst_14 : f32 to vector<16x1xf32>
    %40 = arith.divf %38, %39 : vector<16x1xf32>
    %41 = vector.broadcast %40 : vector<16x1xf32> to vector<16x32xf32>
    %42 = arith.subf %34, %41 : vector<16x32xf32>
    %43 = vector.broadcast %40 : vector<16x1xf32> to vector<16x32xf32>
    %44 = arith.subf %34, %43 : vector<16x32xf32>
    %45 = arith.mulf %42, %44 : vector<16x32xf32>
    %cst_15 = arith.constant dense<0.000000e+00> : vector<16xf32>
    %46 = vector.multi_reduction <add>, %45, %cst_15 [1] : vector<16x32xf32> to vector<16xf32>
    %47 = vector.shape_cast %46 : vector<16xf32> to vector<16x1xf32>
    %cst_16 = arith.constant 3.200000e+01 : f32
    %48 = vector.broadcast %cst_16 : f32 to vector<16x1xf32>
    %49 = arith.divf %47, %48 : vector<16x1xf32>
    %50 = vector.broadcast %40 : vector<16x1xf32> to vector<16x32xf32>
    %51 = arith.subf %34, %50 : vector<16x32xf32>
    %cst_17 = arith.constant 9.99999974E-6 : f32
    %52 = vector.broadcast %cst_17 : f32 to vector<16x1xf32>
    %53 = arith.addf %49, %52 : vector<16x1xf32>
    %54 = math.rsqrt %53 : vector<16x1xf32>
    %55 = vector.broadcast %54 : vector<16x1xf32> to vector<16x32xf32>
    %56 = arith.mulf %51, %55 : vector<16x32xf32>
    %57 = vector.broadcast %35 : vector<1x32xf32> to vector<16x32xf32>
    %58 = arith.mulf %56, %57 : vector<16x32xf32>
    %59 = vector.broadcast %36 : vector<1x32xf32> to vector<16x32xf32>
    %60 = arith.addf %58, %59 : vector<16x32xf32>
    %c0_18 = arith.constant 0 : index
    %c0_19 = arith.constant 0 : index
    %61 = vector.load %arg2[%c0_18, %c0_19] : memref<32x64xf32, #tpu.memory_space<vmem>>, vector<32x64xf32>
    %cst_20 = arith.constant dense<0.000000e+00> : vector<16x64xf32>
    %62 = tpu.matmul %60, %61, %cst_20 {dimension_numbers = #tpu.dot_dimension_numbers<[1], [0], [0], [1], [0, 0, 1, 1], [], []>} : vector<16x32xf32>, vector<32x64xf32>, vector<16x64xf32> -> vector<16x64xf32>
    %63 = vector.extract_strided_slice %2 {offsets = [4, 0], sizes = [1, 64], strides = [1, 1]} : vector<8x128xf32> to vector<1x64xf32>
    %64 = vector.broadcast %63 : vector<1x64xf32> to vector<16x64xf32>
    %65 = arith.addf %62, %64 : vector<16x64xf32>
    %cst_21 = arith.constant 5.000000e-01 : f32
    %66 = vector.broadcast %cst_21 : f32 to vector<16x64xf32>
    %67 = arith.mulf %66, %65 : vector<16x64xf32>
    %cst_22 = arith.constant 4.471500e-02 : f32
    %68 = vector.broadcast %cst_22 : f32 to vector<16x64xf32>
    %69 = arith.mulf %68, %65 : vector<16x64xf32>
    %70 = arith.mulf %69, %65 : vector<16x64xf32>
    %71 = arith.mulf %70, %65 : vector<16x64xf32>
    %72 = arith.addf %65, %71 : vector<16x64xf32>
    %cst_23 = arith.constant 0.797884583 : f32
    %73 = vector.broadcast %cst_23 : f32 to vector<16x64xf32>
    %74 = arith.mulf %73, %72 : vector<16x64xf32>
    %75 = math.tanh %74 : vector<16x64xf32>
    %cst_24 = arith.constant 1.000000e+00 : f32
    %76 = vector.broadcast %cst_24 : f32 to vector<16x64xf32>
    %77 = arith.addf %76, %75 : vector<16x64xf32>
    %78 = arith.mulf %67, %77 : vector<16x64xf32>
    %c0_25 = arith.constant 0 : index
    %c0_26 = arith.constant 0 : index
    %79 = vector.load %arg3[%c0_25, %c0_26] : memref<64x32xf32, #tpu.memory_space<vmem>>, vector<64x32xf32>
    %cst_27 = arith.constant dense<0.000000e+00> : vector<16x32xf32>
    %80 = tpu.matmul %78, %79, %cst_27 {dimension_numbers = #tpu.dot_dimension_numbers<[1], [0], [0], [1], [0, 0, 1, 1], [], []>} : vector<16x64xf32>, vector<64x32xf32>, vector<16x32xf32> -> vector<16x32xf32>
    %81 = vector.extract_strided_slice %2 {offsets = [5, 0], sizes = [1, 32], strides = [1, 1]} : vector<8x128xf32> to vector<1x32xf32>
    %82 = vector.broadcast %81 : vector<1x32xf32> to vector<16x32xf32>
    %83 = arith.addf %80, %82 : vector<16x32xf32>
    %84 = arith.addf %60, %83 : vector<16x32xf32>
    %85 = vector.extract_strided_slice %2 {offsets = [6, 0], sizes = [1, 32], strides = [1, 1]} : vector<8x128xf32> to vector<1x32xf32>
    %86 = vector.extract_strided_slice %2 {offsets = [7, 0], sizes = [1, 32], strides = [1, 1]} : vector<8x128xf32> to vector<1x32xf32>
    %cst_28 = arith.constant dense<0.000000e+00> : vector<16xf32>
    %87 = vector.multi_reduction <add>, %84, %cst_28 [1] : vector<16x32xf32> to vector<16xf32>
    %88 = vector.shape_cast %87 : vector<16xf32> to vector<16x1xf32>
    %cst_29 = arith.constant 3.200000e+01 : f32
    %89 = vector.broadcast %cst_29 : f32 to vector<16x1xf32>
    %90 = arith.divf %88, %89 : vector<16x1xf32>
    %91 = vector.broadcast %90 : vector<16x1xf32> to vector<16x32xf32>
    %92 = arith.subf %84, %91 : vector<16x32xf32>
    %93 = vector.broadcast %90 : vector<16x1xf32> to vector<16x32xf32>
    %94 = arith.subf %84, %93 : vector<16x32xf32>
    %95 = arith.mulf %92, %94 : vector<16x32xf32>
    %cst_30 = arith.constant dense<0.000000e+00> : vector<16xf32>
    %96 = vector.multi_reduction <add>, %95, %cst_30 [1] : vector<16x32xf32> to vector<16xf32>
    %97 = vector.shape_cast %96 : vector<16xf32> to vector<16x1xf32>
    %cst_31 = arith.constant 3.200000e+01 : f32
    %98 = vector.broadcast %cst_31 : f32 to vector<16x1xf32>
    %99 = arith.divf %97, %98 : vector<16x1xf32>
    %100 = vector.broadcast %90 : vector<16x1xf32> to vector<16x32xf32>
    %101 = arith.subf %84, %100 : vector<16x32xf32>
    %cst_32 = arith.constant 9.99999974E-6 : f32
    %102 = vector.broadcast %cst_32 : f32 to vector<16x1xf32>
    %103 = arith.addf %99, %102 : vector<16x1xf32>
    %104 = math.rsqrt %103 : vector<16x1xf32>
    %105 = vector.broadcast %104 : vector<16x1xf32> to vector<16x32xf32>
    %106 = arith.mulf %101, %105 : vector<16x32xf32>
    %107 = vector.broadcast %85 : vector<1x32xf32> to vector<16x32xf32>
    %108 = arith.mulf %106, %107 : vector<16x32xf32>
    %109 = vector.broadcast %86 : vector<1x32xf32> to vector<16x32xf32>
    %110 = arith.addf %108, %109 : vector<16x32xf32>
    %111 = vector.shape_cast %110 : vector<16x32xf32> to vector<2x8x32xf32>
    %c0_33 = arith.constant 0 : index
    %c0_34 = arith.constant 0 : index
    %c0_35 = arith.constant 0 : index
    %112 = vector.load %arg5[%c0_33, %c0_34, %c0_35] : memref<2x8x32xf32, #tpu.memory_space<vmem>>, vector<2x8x32xf32>
    tpu.vector_store %arg5[%c0_33, %c0_34, %c0_35], %111 {strides = array<i32>} : memref<2x8x32xf32, #tpu.memory_space<vmem>>, vector<2x8x32xf32>,
    return
  }
}

</mosaic_0001>

<bundles_post_ra>
// kernel: sexist_model_forward.1
= control target key start
LH: loop header
LB: loop body
LE: loop exit
PB: predicated region body
PF: predicated region fallthrough
CT: control target
= control target key end

     0   :  { %vm31_vm0 = vcmask 261120   ;;  %v980_v6 = vmov 0.0   ;;  %v27_v7 = vlaneseq  ;;  %vm981_vm1 = vmmov 0   ;;  %s982_s30 = smov 96   ;;  %s984_s6 = smov 32   ;;  %s1160_s1 = inlined_call_operand.vmem [shape: f32[32,128], index: 1, kind: input, shape index: {}]   ;;  %s1161_s0 = inlined_call_operand.vmem [shape: f32[2,8,32], index: 0, kind: input, shape index: {}]   ;;  %s1162_s4 = inlined_call_operand.vmem [shape: f32[8,128], index: 4, kind: input, shape index: {}]   ;;  %s1163_s2 = inlined_call_operand.vmem [shape: f32[32,64], index: 2, kind: input, shape index: {}]   ;;  %s1164_s3 = inlined_call_operand.vmem [shape: f32[64,32], index: 3, kind: input, shape index: {}]   ;;  %s1165_s5 = inlined_call_operand.vmem [shape: f32[2,8,32], index: 5, kind: output, shape index: {}]  }
   0x1   :  { %v1018_v0 = vld [vmem:[%s1160_s1 + $0x18] sm:$0xff]  ;;  %v1023_v1 = vld [vmem:[%s1160_s1 + $0x10] sm:$0xff]  ;;  %v1029_v2 = vld [vmem:[%s1161_s0] sm:$0xff]  ;;  %904 = vmatprep.subr.mxu0 %v980_v6  ;;  %906 = vmatprep.mubr.msk.f32.mxu0 %vm981_vm1, %v980_v6  ;;  %vm269_vm2 = vcmask 64512   ;;  %vm705_vm3 = vcmask 523264  }
   0x2   :  { %883 = vmatprep.subr.mxu1 %v1018_v0  ;;  %v1035_v3 = vld [vmem:[%s1160_s1 + $0x8] sm:$0xff]  ;;  %891 = vmatprep.mubr.msk.f32.mxu1 %vm31_vm0, %v1029_v2  ;;  %v1044_v4 = vld [vmem:[%s1160_s1] sm:$0xff]  ;;  %v1057_v8 = vshrl.u32 %v27_v7, 7 }
   0x3   :  { %884 = vmatpush3.msra.mxu1 %v1018_v0  ;;  %v1051_v5 = vld [vmem:[%s1161_s0 + $0x8] sm:$0xff]  ;;  %v1065_v10 = vld [vmem:[%s1162_s4] sm:$0xff]  ;;  %s983_s4 = smov 64  }
   0x4   :  { %885 = vmatprep.subr.mxu1 %v1023_v1  ;;  %v29_v9 = vsub.s32 0, %v1057_v8  ;;  %v446_v52 = vsub.s32 1, %v1057_v8 }
   0x5   :  { %886 = vmatpush3.msra.mxu1 %v1023_v1 }
   0x6   :  { %887 = vmatprep.subr.mxu1 %v1035_v3  ;;  %v30_v12 = vrot.slane %v1065_v10, %v29_v9  ;;  %v447_v53 = vrot.slane %v1065_v10, %v446_v52 }
   0x7   :  { %888 = vmatpush3.msra.mxu1 %v1035_v3 }
   0x8   :  { %889 = vmatprep.subr.mxu1 %v1044_v4 }
   0x9   :  { %890 = vmatpush3.msra.mxu1 %v1044_v4 }
   0xa   :  { %892 = vmatmul.mubr.msk.f32.vlgmr.msra.gmra.mxu1 %vm31_vm0, %v1051_v5  ;;  %894 = vmatprep.subr.mxu1 %v980_v6 }
   0xb   :  { %896 = vmatprep.mubr.msk.f32.mxu1 %vm981_vm1, %v980_v6 }
  0xca   :  { %v893_v11 = vpop.f32.mrf.mxu1 }
  0xcb   :  { %v110_v15 = vadd.f32 %v893_v11, %v30_v12  ;;  %v588_v11 = vld [vmem:[%s1163_s2 + $0x10] sm:$0xff] }
  0xcc   :  { %v104_v13 = vpop.f32.mrf.mxu1 }
  0xcd   :  { %v105_v14 = vadd.f32 %v104_v13, %v30_v12  ;;  %v587_v12 = vld [vmem:[%s1163_s2 + $0x8] sm:$0xff]  ;;  %v586_v13 = vld [vmem:[%s1163_s2] sm:$0xff] }
  0xcf   :  { %114 = vrot.lane.b32.xlu0 %v105_v14, %s982_s30 }
  0xd3   :  { %191 = vrot.lane.b32.xlu0 %v110_v15, %s982_s30 }
 0x141   :  { %v115_v16 = vpop.permute.xlu0 %114 }
 0x142   :  { %895 = vmatpush3.xpose.msk.msra.mxu1 %vm31_vm0, %v115_v16 }
 0x143   :  { %899 = vmatprep.subr.mxu1 %v980_v6 }
 0x145   :  { %897 = vmatmul.mubr.msk.f32.vlgmr.msra.gmra.mxu1 %vm31_vm0, %v105_v14  ;;  %v192_v17 = vpop.permute.xlu0 %191 }
 0x146   :  { %900 = vmatpush3.xpose.msk.msra.mxu1 %vm31_vm0, %v192_v17  ;;  %901 = vmatprep.mubr.msk.f32.mxu1 %vm981_vm1, %v980_v6 }
 0x147   :  { %909 = vmatprep.subr.mxu1 %v980_v6 }
 0x149   :  { %902 = vmatmul.mubr.msk.f32.vlgmr.msra.gmra.mxu1 %vm31_vm0, %v110_v15 }
 0x14a   :  { %911 = vmatprep.mubr.msk.f32.mxu1 %vm981_vm1, %v980_v6 }
 0x205   :  { %v186_v18 = vpop.f32.mrf.mxu1 }
 0x206   :  { %v267_v19 = vmul.f32 0.17677669, %v186_v18 }
 0x207   :  { %v898_v20 = vpop.f32.mrf.mxu1 }
 0x208   :  { %v270_v21 = vsel %vm269_vm2, %v267_v19, -inf  ;;  %v576_v20 = vsub.s32 2, %v1057_v8 }
 0x209   :  { %271 = vmax.xlane.f32.xlu1 %v270_v21  ;;  %v263_v22 = vpop.f32.mrf.mxu1  ;;  %v582_v21 = vsub.s32 3, %v1057_v8 }
 0x20a   :  { %v268_v23 = vmul.f32 0.17677669, %v263_v22  ;;  %v577_v22 = vrot.slane %v1065_v10, %v576_v20 }
 0x20b   :  { %v903_v24 = vpop.f32.mrf.mxu1 }
 0x20c   :  { %v273_v25 = vsel %vm269_vm2, %v268_v23, -inf }
 0x20d   :  { %274 = vmax.xlane.f32.xlu1 %v273_v25  ;;  %v583_v25 = vrot.slane %v1065_v10, %v582_v21 }
 0x21e   :  { %292 = vrot.lane.b32.xlu1 %v105_v14, %s983_s4 }
 0x292   :  { %v272_v26 = vpop.xlane.xlu1 %271 }
 0x293   :  { %v276_v27 = vsub.f32 %v267_v19, %v272_v26 }
 0x295   :  { %v278_v28 = vmul.f32 1.442695, %v276_v27 }
 0x296   :  { %v275_v29 = vpop.xlane.xlu1 %274 }
 0x297   :  { %960 = vpow2.f32 %v278_v28  ;;  %v277_v30 = vsub.f32 %v268_v23, %v275_v29 }
 0x299   :  { %v280_v31 = vmul.f32 1.442695, %v277_v30 }
 0x29a   :  { %v293_v32 = vpop.permute.xlu1 %292 }
 0x29b   :  { %962 = vpow2.f32 %v280_v31  ;;  %905 = vmatpush3.msra.mxu0 %v293_v32  ;;  %v700_v32 = vld [vmem:[%s1164_s3 + $0x38] sm:$0xff] }
 0x2a4   :  { %v961_v33 = vpop.eup %960 }
 0x2a5   :  { %v282_v34 = vsel %vm269_vm2, %v961_v33, 0.0 }
 0x2a6   :  { %283 = vadd.xlane.f32.xlu0 %v282_v34  ;;  %v698_v34 = vld [vmem:[%s1164_s3 + $0x28] sm:$0xff] }
 0x2a8   :  { %v963_v35 = vpop.eup %962 }
 0x2a9   :  { %v285_v36 = vsel %vm269_vm2, %v963_v35, 0.0 }
 0x2aa   :  { %286 = vadd.xlane.f32.xlu1 %v285_v36  ;;  %v696_v36 = vld [vmem:[%s1164_s3 + $0x18] sm:$0xff] }
 0x2bb   :  { %368 = vrot.lane.b32.xlu1 %v110_v15, %s983_s4 }
 0x2bc   :  { %454 = vrot.lane.b32.xlu0 %v1035_v3, %s984_s6 }
 0x2bf   :  { %458 = vrot.lane.b32.xlu1 %v1018_v0, %s984_s6 }
 0x2c3   :  { %456 = vrot.lane.b32.xlu1 %v1023_v1, %s984_s6 }
 0x2c7   :  { %452 = vrot.lane.b32.xlu1 %v1044_v4, %s984_s6 }
 0x32f   :  { %v284_v37 = vpop.xlane.xlu0 %283 }
 0x330   :  { %964 = vrcp.f32 %v284_v37  ;;  %v695_v37 = vld [vmem:[%s1164_s3 + $0x10] sm:$0xff] }
 0x333   :  { %v287_v38 = vpop.xlane.xlu1 %286  ;;  %v455_v46 = vpop.permute.xlu0 %454 }
 0x334   :  { %966 = vrcp.f32 %v287_v38  ;;  %v694_v38 = vld [vmem:[%s1164_s3 + $0x8] sm:$0xff] }
 0x337   :  { %v369_v39 = vpop.permute.xlu1 %368 }
 0x338   :  { %910 = vmatpush3.msra.mxu1 %v369_v39  ;;  %v693_v39 = vld [vmem:[%s1164_s3] sm:$0xff] }
 0x33b   :  { %v459_v40 = vpop.permute.xlu1 %458 }
 0x33c   :  { %914 = vmatprep.subr.mxu0 %v459_v40 }
 0x33d   :  { %v965_v41 = vpop.eup %964 }
 0x33e   :  { %v290_v42 = vmul.f32 %v965_v41, %v961_v33  ;;  %v699_v33 = vld [vmem:[%s1164_s3 + $0x30] sm:$0xff] }
 0x33f   :  { %v457_v43 = vpop.permute.xlu1 %456 }
 0x340   :  { %907 = vmatmul.mubr.msk.f32.vlgmr.msra.gmra.mxu0 %vm269_vm2, %v290_v42 }
 0x341   :  { %v967_v44 = vpop.eup %966  ;;  %915 = vmatpush3.msra.mxu0 %v459_v40  ;;  %v592_v40 = vsub.s32 4, %v1057_v8 }
 0x342   :  { %v291_v45 = vmul.f32 %v967_v44, %v963_v35  ;;  %916 = vmatprep.subr.mxu0 %v457_v43  ;;  %v697_v35 = vld [vmem:[%s1164_s3 + $0x20] sm:$0xff] }
 0x343   :  { %917 = vmatpush3.msra.mxu0 %v457_v43  ;;  %v453_v47 = vpop.permute.xlu1 %452  ;;  %v593_v41 = vrot.slane %v1065_v10, %v592_v40 }
 0x344   :  { %912 = vmatmul.mubr.msk.f32.vlgmr.msra.gmra.mxu1 %vm269_vm2, %v291_v45  ;;  %918 = vmatprep.subr.mxu0 %v455_v46 }
 0x345   :  { %919 = vmatpush3.msra.mxu0 %v455_v46 }
 0x346   :  { %920 = vmatprep.subr.mxu0 %v453_v47 }
 0x347   :  { %921 = vmatpush3.msra.mxu0 %v453_v47 }
 0x348   :  { %936 = vmatprep.subr.mxu0 %v700_v32 }
 0x400   :  { %v364_v48 = vpop.f32.mrf.mxu0 }
 0x401   :  { %922 = vmatprep.mubr.msk.f32.mxu0 %vm31_vm0, %v364_v48 }
 0x402   :  { %v908_v49 = vpop.f32.mrf.mxu0 }
 0x404   :  { %v440_v50 = vpop.f32.mrf.mxu1 }
 0x405   :  { %923 = vmatmul.mubr.msk.f32.vlgmr.msra.gmra.mxu0 %vm31_vm0, %v440_v50 }
 0x406   :  { %v913_v51 = vpop.f32.mrf.mxu1  ;;  %937 = vmatpush3.msra.mxu0 %v700_v32 }
 0x407   :  { %938 = vmatprep.subr.mxu0 %v699_v33 }
 0x408   :  { %939 = vmatpush3.msra.mxu0 %v699_v33 }
 0x409   :  { %940 = vmatprep.subr.mxu0 %v698_v34 }
 0x40a   :  { %941 = vmatpush3.msra.mxu0 %v698_v34 }
 0x40b   :  { %942 = vmatprep.subr.mxu0 %v697_v35 }
 0x40c   :  { %943 = vmatpush3.msra.mxu0 %v697_v35 }
 0x40d   :  { %944 = vmatprep.subr.mxu0 %v696_v36 }
 0x40e   :  { %945 = vmatpush3.msra.mxu0 %v696_v36 }
 0x40f   :  { %946 = vmatprep.subr.mxu0 %v695_v37 }
 0x410   :  { %947 = vmatpush3.msra.mxu0 %v695_v37 }
 0x411   :  { %948 = vmatprep.subr.mxu0 %v694_v38 }
 0x412   :  { %949 = vmatpush3.msra.mxu0 %v694_v38 }
 0x413   :  { %950 = vmatprep.subr.mxu0 %v693_v39 }
 0x414   :  { %951 = vmatpush3.msra.mxu0 %v693_v39 }
 0x4c5   :  { %v924_v54 = vpop.f32.mrf.mxu0 }
 0x4c6   :  { %v542_v55 = vadd.f32 %v924_v54, %v447_v53 }
 0x4c7   :  { %v536_v56 = vpop.f32.mrf.mxu0 }
 0x4c8   :  { %v537_v57 = vadd.f32 %v536_v56, %v447_v53  ;;  %v546_v58 = vadd.f32 %v542_v55, %v1051_v5 }
 0x4ca   :  { %v550_v59 = vsel %vm31_vm0, %v546_v58, 0.0  ;;  %v545_v60 = vadd.f32 %v537_v57, %v1029_v2  ;;  %v589_v2 = vld [vmem:[%s1163_s2 + $0x18] sm:$0xff] }
 0x4cb   :  { %551 = vadd.xlane.f32.xlu0 %v550_v59  ;;  %925 = vmatprep.subr.mxu1 %v589_v2 }
 0x4cc   :  { %v547_v61 = vsel %vm31_vm0, %v545_v60, 0.0  ;;  %926 = vmatpush3.msra.mxu1 %v589_v2 }
 0x4cd   :  { %548 = vadd.xlane.f32.xlu1 %v547_v61  ;;  %927 = vmatprep.subr.mxu1 %v588_v11 }
 0x4ce   :  { %928 = vmatpush3.msra.mxu1 %v588_v11 }
 0x4cf   :  { %929 = vmatprep.subr.mxu1 %v587_v12 }
 0x4d0   :  { %930 = vmatpush3.msra.mxu1 %v587_v12 }
 0x4d1   :  { %931 = vmatprep.subr.mxu1 %v586_v13 }
 0x4d2   :  { %932 = vmatpush3.msra.mxu1 %v586_v13 }
 0x554   :  { %v552_v62 = vpop.xlane.xlu0 %551 }
 0x555   :  { %v555_v63 = vmul.f32 0.03125, %v552_v62 }
 0x556   :  { %v549_v0 = vpop.xlane.xlu1 %548 }
 0x557   :  { %v554_v1 = vmul.f32 0.03125, %v549_v0  ;;  %v557_v3 = vsub.f32 %v546_v58, %v555_v63  ;;  %v703_v0 = vsub.s32 5, %v1057_v8 }
 0x559   :  { %v556_v4 = vsub.f32 %v545_v60, %v554_v1  ;;  %v559_v9 = vmul.f32 %v557_v3, %v557_v3  ;;  %v704_v1 = vrot.slane %v1065_v10, %v703_v0 }
 0x55b   :  { %v558_v6 = vmul.f32 %v556_v4, %v556_v4  ;;  %v563_v5 = vsel %vm31_vm0, %v559_v9, 0.0 }
 0x55d   :  { %v560_v7 = vsel %vm31_vm0, %v558_v6, 0.0 }
 0x55e   :  { %561 = vadd.xlane.f32.xlu1 %v560_v7 }
 0x562   :  { %564 = vadd.xlane.f32.xlu1 %v563_v5 }
 0x5e7   :  { %v562_v14 = vpop.xlane.xlu1 %561 }
 0x5e8   :  { %v566_v15 = vmul.f32 0.03125, %v562_v14 }
 0x5ea   :  { %v568_v16 = vadd.f32 1e-05, %v566_v15 }
 0x5eb   :  { %v565_v17 = vpop.xlane.xlu1 %564 }
 0x5ec   :  { %968 = vrsqrt.f32 %v568_v16  ;;  %v567_v18 = vmul.f32 0.03125, %v565_v17 }
 0x5ee   :  { %v569_v19 = vadd.f32 1e-05, %v567_v18 }
 0x5f0   :  { %970 = vrsqrt.f32 %v569_v19 }
 0x5f9   :  { %v969_v23 = vpop.eup %968 }
 0x5fa   :  { %v572_v24 = vmul.f32 %v969_v23, %v556_v4 }
 0x5fc   :  { %v578_v26 = vmul.f32 %v577_v22, %v572_v24 }
 0x5fd   :  { %v971_v27 = vpop.eup %970 }
 0x5fe   :  { %v573_v28 = vmul.f32 %v971_v27, %v557_v3  ;;  %v1110_v29 = vadd.f32 %v583_v25, %v578_v26 }
 0x600   :  { %v579_v30 = vmul.f32 %v577_v22, %v573_v28  ;;  %933 = vmatprep.mubr.msk.f32.mxu1 %vm31_vm0, %v1110_v29  ;;  %v817_v28 = vsub.s32 6, %v1057_v8 }
 0x602   :  { %v585_v31 = vadd.f32 %v583_v25, %v579_v30  ;;  %v818_v30 = vrot.slane %v1065_v10, %v817_v28 }
 0x604   :  { %934 = vmatmul.mubr.msk.f32.vlgmr.msra.gmra.mxu1 %vm31_vm0, %v585_v31 }
 0x6c4   :  { %v935_v42 = vpop.f32.mrf.mxu1 }
 0x6c5   :  { %v672_v43 = vadd.f32 %v935_v42, %v593_v41 }
 0x6c6   :  { %v666_v44 = vpop.f32.mrf.mxu1 }
 0x6c7   :  { %v678_v45 = vmul.f32 0.044715, %v672_v43  ;;  %v667_v46 = vadd.f32 %v666_v44, %v593_v41  ;;  %v676_v61 = vmul.f32 0.5, %v672_v43 }
 0x6c9   :  { %v680_v47 = vmul.f32 %v678_v45, %v672_v43  ;;  %v677_v48 = vmul.f32 0.044715, %v667_v46  ;;  %v675_v59 = vmul.f32 0.5, %v667_v46 }
 0x6cb   :  { %v682_v49 = vmul.f32 %v680_v47, %v672_v43  ;;  %v679_v50 = vmul.f32 %v677_v48, %v667_v46 }
 0x6cd   :  { %v684_v51 = vadd.f32 %v682_v49, %v672_v43  ;;  %v681_v52 = vmul.f32 %v679_v50, %v667_v46 }
 0x6cf   :  { %v686_v53 = vmul.f32 0.7978846, %v684_v51  ;;  %v683_v54 = vadd.f32 %v681_v52, %v667_v46 }
 0x6d1   :  { %972 = vtanh.f32 %v686_v53  ;;  %v685_v55 = vmul.f32 0.7978846, %v683_v54 }
 0x6d3   :  { %974 = vtanh.f32 %v685_v55 }
 0x6de   :  { %v973_v56 = vpop.eup %972 }
 0x6df   :  { %v690_v58 = vadd.f32 1.0, %v973_v56 }
 0x6e0   :  { %v975_v57 = vpop.eup %974 }
 0x6e1   :  { %v689_v60 = vadd.f32 1.0, %v975_v57  ;;  %v692_v63 = vmul.f32 %v690_v58, %v676_v61 }
 0x6e3   :  { %v691_v62 = vmul.f32 %v689_v60, %v675_v59 }
 0x6e5   :  { %952 = vmatprep.mubr.msk.f32.mxu0 %vm705_vm3, %v691_v62 }
 0x6e6   :  { %953 = vmatmul.mubr.msk.f32.vlgmr.msra.gmra.mxu0 %vm705_vm3, %v692_v63 }
 0x7a6   :  { %v954_v3 = vpop.f32.mrf.mxu0 }
 0x7a7   :  { %v784_v4 = vadd.f32 %v954_v3, %v704_v1 }
 0x7a8   :  { %v778_v6 = vpop.f32.mrf.mxu0 }
 0x7a9   :  { %v779_v7 = vadd.f32 %v778_v6, %v704_v1  ;;  %v788_v9 = vadd.f32 %v784_v4, %v585_v31 }
 0x7ab   :  { %v792_v5 = vsel %vm31_vm0, %v788_v9, 0.0  ;;  %v787_v2 = vadd.f32 %v779_v7, %v1110_v29  ;;  %v823_v29 = vsub.s32 7, %v1057_v8 }
 0x7ac   :  { %793 = vadd.xlane.f32.xlu0 %v792_v5 }
 0x7ad   :  { %v789_v11 = vsel %vm31_vm0, %v787_v2, 0.0  ;;  %v824_v32 = vrot.slane %v1065_v10, %v823_v29 }
 0x7ae   :  { %790 = vadd.xlane.f32.xlu1 %v789_v11 }
 0x835   :  { %v794_v12 = vpop.xlane.xlu0 %793 }
 0x836   :  { %v796_v13 = vmul.f32 0.03125, %v794_v12 }
 0x837   :  { %v791_v14 = vpop.xlane.xlu1 %790 }
 0x838   :  { %v798_v15 = vsub.f32 %v788_v9, %v796_v13  ;;  %v795_v16 = vmul.f32 0.03125, %v791_v14 }
 0x83a   :  { %v797_v17 = vsub.f32 %v787_v2, %v795_v16  ;;  %v800_v18 = vmul.f32 %v798_v15, %v798_v15 }
 0x83c   :  { %v804_v19 = vsel %vm31_vm0, %v800_v18, 0.0  ;;  %v799_v20 = vmul.f32 %v797_v17, %v797_v17 }
 0x83d   :  { %805 = vadd.xlane.f32.xlu0 %v804_v19 }
 0x83e   :  { %v801_v21 = vsel %vm31_vm0, %v799_v20, 0.0 }
 0x83f   :  { %802 = vadd.xlane.f32.xlu1 %v801_v21 }
 0x8c6   :  { %v806_v22 = vpop.xlane.xlu0 %805 }
 0x8c7   :  { %v808_v23 = vmul.f32 0.03125, %v806_v22 }
 0x8c8   :  { %v803_v24 = vpop.xlane.xlu1 %802 }
 0x8c9   :  { %v810_v25 = vadd.f32 1e-05, %v808_v23  ;;  %v807_v26 = vmul.f32 0.03125, %v803_v24 }
 0x8cb   :  { %976 = vrsqrt.f32 %v810_v25  ;;  %v809_v27 = vadd.f32 1e-05, %v807_v26 }
 0x8cd   :  { %978 = vrsqrt.f32 %v809_v27 }
 0x8d8   :  { %v977_v31 = vpop.eup %976 }
 0x8d9   :  { %v814_v33 = vmul.f32 %v977_v31, %v798_v15 }
 0x8da   :  { %v979_v34 = vpop.eup %978 }
 0x8db   :  { %v820_v35 = vmul.f32 %v818_v30, %v814_v33  ;;  %v813_v36 = vmul.f32 %v979_v34, %v797_v17 }
 0x8dd   :  { %v826_v37 = vadd.f32 %v824_v32, %v820_v35  ;;  %v819_v38 = vmul.f32 %v818_v30, %v813_v36 }
 0x8df   :  { %828 = vst.msk [vmem:[%s1165_s5 + $0x8] sm:$0xff] %vm31_vm0, %v826_v37  ;;  %v825_v39 = vadd.f32 %v824_v32, %v819_v38 }
 0x8e1   :  { %827 = vst.msk [vmem:[%s1165_s5] sm:$0xff] %vm31_vm0, %v825_v39 }

</bundles_post_ra>
